<compile_context>
chip_gen: v6e
topology: v6e:2x2x1
jax: 0.10.0
libtpu: 0.0.40
codegen_flags: <defaults>
</compile_context>

<pallas_src>
import jax
import jax.numpy as jnp
from jax.experimental import pallas as pl
from jax.experimental.pallas import tpu as pltpu


def permute_kernel(x_ref, v1_ref):
    # v1 = x1.permute(0, 2, 1): one batched transpose over the whole block (XLU),
    # written with a single full-block store.
    v1_ref[...] = jnp.transpose(x_ref[...], (0, 2, 1))


def model_forward(x1):
    """x1: (C, W, H) f32.

    Returns v1 = x1.permute(0, 2, 1) — exactly what Model.forward returns.
    The Conv2d output v2 is discarded by the module, so it is not computed
    (dead code with respect to the returned value; see perf-review notes above).
    """
    C, W, H = x1.shape
    return pl.pallas_call(
        permute_kernel,
        out_shape=jax.ShapeDtypeStruct((C, H, W), x1.dtype),
        in_specs=[pl.BlockSpec(memory_space=pltpu.MemorySpace.VMEM)],   # x1 (C, W, H)
        out_specs=pl.BlockSpec(memory_space=pltpu.MemorySpace.VMEM),    # v1 (C, H, W)
    )(x1)


if __name__ == "__main__":
    key = jax.random.PRNGKey(0)

    # Module-native sizes: Conv2d(5, 5, 3, groups=5) over a 20x20 spatial map.
    C, W, H = 5, 20, 20
    x1 = jax.random.normal(key, (C, W, H), dtype=jnp.float32)

    v1 = model_forward(x1)
    jax.block_until_ready(v1)

    # Reference check in plain JAX (forward returns only the permute).
    v1_ref = jnp.transpose(x1, (0, 2, 1))
    assert v1.shape == (C, H, W)
    assert jnp.allclose(v1, v1_ref, atol=1e-6, rtol=1e-6)

    print("KERNEL_OK")
</pallas_src>

<mosaic_0001>
module attributes {stable_mosaic.version = 11 : i64} {
  func.func @permute_kernel(%arg0: memref<5x20x20xf32, #tpu.memory_space<vmem>>, %arg1: memref<5x20x20xf32, #tpu.memory_space<vmem>>) attributes {dimension_semantics = [], scalar_prefetch = 0 : i64, scratch_operands = 0 : i64, tpu.core_type = #tpu.core_type<tc>} {
    %c0 = arith.constant 0 : index
    %c0_0 = arith.constant 0 : index
    %c0_1 = arith.constant 0 : index
    %0 = vector.load %arg0[%c0, %c0_0, %c0_1] : memref<5x20x20xf32, #tpu.memory_space<vmem>>, vector<5x20x20xf32>
    %1 = tpu.transpose %0, [0, 2, 1] : vector<5x20x20xf32> -> vector<5x20x20xf32>
    %c0_2 = arith.constant 0 : index
    %c0_3 = arith.constant 0 : index
    %c0_4 = arith.constant 0 : index
    %2 = vector.load %arg1[%c0_2, %c0_3, %c0_4] : memref<5x20x20xf32, #tpu.memory_space<vmem>>, vector<5x20x20xf32>
    tpu.vector_store %arg1[%c0_2, %c0_3, %c0_4], %1 {strides = array<i32>} : memref<5x20x20xf32, #tpu.memory_space<vmem>>, vector<5x20x20xf32>,
    return
  }
}

</mosaic_0001>

<bundles_post_ra>
// kernel: tpu_custom_call.1
= control target key start
LH: loop header
LB: loop body
LE: loop exit
PB: predicated region body
PF: predicated region fallthrough
CT: control target
= control target key end

     0   :  { %6 = vsyncpa [#allocation3], 0  ;;  %s322_s0 = inlined_call_operand.hbm [shape: f32[5,20,20], index: 0, kind: input, shape index: {}]   ;;  %s323_s1 = inlined_call_operand.hbm [shape: f32[5,20,20], index: 1, kind: output, shape index: {}]  }
   0x1   :  { %7 = vsyncpa [#allocation4], 0  ;;  %s281_s6 = smov [#allocation2]  }
   0x2   :  { %s13_s7 = sshll.u32 %s281_s6, 4  ;;  %s14_s7 = int_to_ptr.vmem [resolvable:$true] %s13_s7 }
   0x3   :  { %s245_s8 = scalar_lea.vmem %s14_s7, 1920  ;;  %p250_p1 = scmp.lt.s32.totalorder %s14_s7, %s14_s7 }
   0x4   :  { %p246_p0 = scmp.ne.s32.totalorder %s14_s7, %s245_s8  ;;  %p251_p2 = scmp.lt.s32.totalorder %s245_s8, %s245_s8 }
   0x6   :  { %p252_p3 = por %p251_p2, %p250_p1 }
   0x8   :  { %p253_p4 = pnand %p252_p3, %p246_p0 }
   0xa   :  { %256 = shalt.err (!%p253_p4)
}
   0xb   :  { %s282_s9 = smov 128   ;;  %s283_s10 = smov 8  }
   0xc   :  { %19 = dma.hbm_to_vmem [thread:$0]  %s322_s0, 1920, %s14_s7, [#allocation3], %s282_s9, %s282_s9, %s283_s10  }
   0xd   :  { %277 = dma.done.wait [#allocation3], 1920  }
   0xe   :  { %278 = vsyncadd [#allocation3], 4294965376  ;;  %v23_v0 = vld [vmem:[#allocation2] sm:$0xff]  ;;  %v26_v1 = vld [vmem:[#allocation2 + $0x18] sm:$0xff]  ;;  %vm198_vm0 = vcmask 162816   ;;  %vm201_vm1 = vcmask 158720  }
   0xf   :  { %38 = vxpose.xlu0.b32.start [1/3] (short) (narrow) %v23_v0, 24  ;;  %v24_v2 = vld [vmem:[#allocation2 + $0x8] sm:$0xff]  ;;  %70 = vxpose.xlu1.b32.start [1/3] (short) (narrow) %v26_v1, 24  ;;  %v27_v3 = vld [vmem:[#allocation2 + $0x20] sm:$0xff]  ;;  %v25_v4 = vld [vmem:[#allocation2 + $0x10] sm:$0xf] }
  0x10   :  { %v28_v5 = vld [vmem:[#allocation2 + $0x28] sm:$0xf]  ;;  %v29_v6 = vld [vmem:[#allocation2 + $0x30] sm:$0xff]  ;;  %v30_v8 = vld [vmem:[#allocation2 + $0x38] sm:$0xff]  ;;  %s284_s0 = smov [#allocation5]  }
  0x11   :  { %v32_v7 = vld [vmem:[#allocation2 + $0x48] sm:$0xff]  ;;  %v33_v9 = vld [vmem:[#allocation2 + $0x50] sm:$0xff]  ;;  %v31_v10 = vld [vmem:[#allocation2 + $0x40] sm:$0xf]  ;;  %s220_s13 = sshll.u32 %s284_s0, 4  ;;  %s221_s13 = int_to_ptr.vmem [resolvable:$true] %s220_s13 }
  0x12   :  { %v34_v11 = vld [vmem:[#allocation2 + $0x58] sm:$0xf]  ;;  %v35_v12 = vld [vmem:[#allocation2 + $0x60] sm:$0xff]  ;;  %v36_v13 = vld [vmem:[#allocation2 + $0x68] sm:$0xff]  ;;  %s257_s14 = scalar_lea.vmem %s221_s13, 1920  ;;  %p262_p6 = scmp.lt.s32.totalorder %s221_s13, %s221_s13 }
  0x13   :  { %39 = vxpose.xlu0.b32.cont [2/3] (short) (narrow) %v24_v2, 24  ;;  %71 = vxpose.xlu1.b32.cont [2/3] (short) (narrow) %v27_v3, 24  ;;  %v37_v14 = vld [vmem:[#allocation2 + $0x70] sm:$0xf]  ;;  %p258_p5 = scmp.ne.s32.totalorder %s221_s13, %s257_s14  ;;  %p263_p7 = scmp.lt.s32.totalorder %s257_s14, %s257_s14 }
  0x15   :  { %p264_p8 = por %p263_p7, %p262_p6 }
  0x17   :  { %40 = vxpose.xlu0.b32.end [3/3] (short) (narrow) %v25_v4, 24  ;;  %72 = vxpose.xlu1.b32.end [3/3] (short) (narrow) %v28_v5, 24  ;;  %p265_p9 = pnand %p264_p8, %p258_p5 }
  0x1b   :  { %102 = vxpose.xlu0.b32.start [1/3] (short) (narrow) %v29_v6, 24  ;;  %134 = vxpose.xlu1.b32.start [1/3] (short) (narrow) %v32_v7, 24 }
  0x1f   :  { %103 = vxpose.xlu0.b32.cont [2/3] (short) (narrow) %v30_v8, 24  ;;  %135 = vxpose.xlu1.b32.cont [2/3] (short) (narrow) %v33_v9, 24 }
  0x23   :  { %104 = vxpose.xlu0.b32.end [3/3] (short) (narrow) %v31_v10, 24  ;;  %136 = vxpose.xlu1.b32.end [3/3] (short) (narrow) %v34_v11, 24 }
  0x27   :  { %166 = vxpose.xlu0.b32.start [1/3] (short) (narrow) %v35_v12, 24 }
  0x2b   :  { %167 = vxpose.xlu0.b32.cont [2/3] (short) (narrow) %v36_v13, 24 }
  0x2f   :  { %168 = vxpose.xlu0.b32.end [3/3] (short) (narrow) %v37_v14, 24 }
  0x8b   :  { %v54_v15 = vpop.trf.xlu0  ;;  %v86_v16 = vpop.trf.xlu1 }
  0x8c   :  { %199 = vst.msk [vmem:[#allocation5] sm:$0xff] %vm198_vm0, %v54_v15  ;;  %203 = vst.msk [vmem:[#allocation5 + $0x18] sm:$0xff] %vm198_vm0, %v86_v16 }
  0x8f   :  { %v55_v17 = vpop.trf.xlu0  ;;  %v87_v18 = vpop.trf.xlu1 }
  0x90   :  { %200 = vst.msk [vmem:[#allocation5 + $0x8] sm:$0xff] %vm198_vm0, %v55_v17  ;;  %204 = vst.msk [vmem:[#allocation5 + $0x20] sm:$0xff] %vm198_vm0, %v87_v18 }
  0x93   :  { %v56_v19 = vpop.trf.xlu0  ;;  %v88_v20 = vpop.trf.xlu1 }
  0x94   :  { %202 = vst.msk [vmem:[#allocation5 + $0x10] sm:$0xf] %vm201_vm1, %v56_v19  ;;  %205 = vst.msk [vmem:[#allocation5 + $0x28] sm:$0xf] %vm201_vm1, %v88_v20 }
  0x97   :  { %v118_v21 = vpop.trf.xlu0  ;;  %v150_v22 = vpop.trf.xlu1 }
  0x98   :  { %206 = vst.msk [vmem:[#allocation5 + $0x30] sm:$0xff] %vm198_vm0, %v118_v21  ;;  %209 = vst.msk [vmem:[#allocation5 + $0x48] sm:$0xff] %vm198_vm0, %v150_v22 }
  0x9b   :  { %v119_v23 = vpop.trf.xlu0  ;;  %v151_v24 = vpop.trf.xlu1 }
  0x9c   :  { %207 = vst.msk [vmem:[#allocation5 + $0x38] sm:$0xff] %vm198_vm0, %v119_v23  ;;  %210 = vst.msk [vmem:[#allocation5 + $0x50] sm:$0xff] %vm198_vm0, %v151_v24 }
  0x9f   :  { %v120_v25 = vpop.trf.xlu0  ;;  %v152_v26 = vpop.trf.xlu1 }
  0xa0   :  { %208 = vst.msk [vmem:[#allocation5 + $0x40] sm:$0xf] %vm201_vm1, %v120_v25  ;;  %211 = vst.msk [vmem:[#allocation5 + $0x58] sm:$0xf] %vm201_vm1, %v152_v26 }
  0xa3   :  { %v182_v27 = vpop.trf.xlu0 }
  0xa4   :  { %212 = vst.msk [vmem:[#allocation5 + $0x60] sm:$0xff] %vm198_vm0, %v182_v27 }
  0xa7   :  { %v183_v28 = vpop.trf.xlu0 }
  0xa8   :  { %213 = vst.msk [vmem:[#allocation5 + $0x68] sm:$0xff] %vm198_vm0, %v183_v28 }
  0xab   :  { %v184_v29 = vpop.trf.xlu0 }
  0xac   :  { %214 = vst.msk [vmem:[#allocation5 + $0x70] sm:$0xf] %vm201_vm1, %v184_v29 }
  0xad   :  { %268 = shalt.err (!%p265_p9)
}
  0xae   :  { %226 = dma.vmem_to_hbm [thread:$0]  %s221_s13, 1920, %s323_s1, [#allocation4], %s282_s9, %s282_s9, %s283_s10  }
  0xaf   :  { %279 = dma.done.wait [#allocation4], 1920  }
  0xb0   :  { %280 = vsyncadd [#allocation4], 4294965376 }
  0xb1   :  { %230 = vsyncpa [#allocation3], 1 }
  0xb2   :  { %231 = vsyncpa [#allocation4], 1 }

</bundles_post_ra>
